<compile_context>
chip_gen: v6e
topology: v6e:2x2x1
jax: 0.10.0
libtpu: 0.0.40
codegen_flags: <defaults>
</compile_context>

<pallas_src>
import jax
import jax.numpy as jnp
from jax.experimental import pallas as pl
from jax.experimental.pallas import tpu as pltpu

HIDDEN_SIZE = 16
INPUT_SIZE = 1
NUM_LAYERS = 1   # single layer implemented (module uses num_layers=1)
OUTPUT_SIZE = 1


def _rnn_kernel(x_ref, p_ref, out_ref):
    """Single invocation: VPU input projection + fully unrolled serial recurrence.

    x_ref:   (B, S)      input (I == 1, squeezed), batch-major
    p_ref:   (H + 4, H)  packed params:
                 rows 0..H-1 : W_hh^T
                 row  H      : W_ih^T            (I == 1 -> one row)
                 row  H + 1  : b_ih + b_hh
                 row  H + 2  : fc.weight          (O == 1 -> one row)
                 row  H + 3  : fc.bias in lane 0
    out_ref: (B, O)
    """
    B, S = x_ref.shape
    H = p_ref.shape[1]

    p = p_ref[...]                       # one load of all parameters
    w_hh = p[0:H, :]                     # (H, H) = W_hh^T
    w_ih_row = p[H:H + 1, :]             # (1, H) = W_ih^T
    b_rnn = p[H + 1:H + 2, :]            # (1, H) = b_ih + b_hh
    w_fc_row = p[H + 2:H + 3, :]         # (1, H) = fc.weight
    b_fc = p[H + 3:H + 4, 0:1]           # (1, 1) = fc.bias

    x = x_ref[...]                       # (B, S)

    # Input projection (K = 1): rank-1 outer product on the VPU, no MXU.
    # Independent of h, so the scheduler can keep it off the serial chain.
    pre = [x[:, t:t + 1] * w_ih_row + b_rnn for t in range(S)]   # S x (B, H)

    # t = 0 peeled: h_0 == 0  =>  h_1 = tanh(pre_0), no MXU dot with zeros.
    h = jnp.tanh(pre[0])

    # Strictly serial recurrence, fully unrolled (S static): one tiny
    # (B,H)@(H,H) MXU dot + tanh per step on the critical path.
    for t in range(1, S):
        h = jnp.tanh(pre[t] + jnp.dot(h, w_hh, preferred_element_type=jnp.float32))

    # O = 1 head: VPU multiply + lane reduction (XLU), no final MXU round trip.
    out_ref[...] = jnp.sum(h * w_fc_row, axis=-1, keepdims=True) + b_fc


def pack_params(params):
    """Pack the six tiny parameter tensors into one (H+4, H) f32 operand.

    Built ONCE outside the hot path so the kernel sees exactly two inputs
    (x and the packed params) -> two DMAs instead of six.
    """
    w_ih, w_hh, b_ih, b_hh, w_fc, b_fc = params
    H = w_hh.shape[0]
    O = w_fc.shape[0]
    rows = [
        w_hh.T.astype(jnp.float32),                                   # (H, H)
        w_ih.T.astype(jnp.float32),                                   # (1, H)  (I == 1)
        (b_ih + b_hh).reshape(1, H).astype(jnp.float32),              # (1, H)
        w_fc.astype(jnp.float32).reshape(O, H),                       # (1, H)  (O == 1)
        jnp.pad(b_fc.astype(jnp.float32).reshape(1, O),
                ((0, 0), (0, H - O))),                                # (1, H)  bias in lane 0
    ]
    return jnp.concatenate(rows, axis=0)                              # (H + 4, H)


def rnn_forward(x_bsi, packed_params):
    """x_bsi: (B, S, I=1) batch-first float32. Returns (B, OUTPUT_SIZE)."""
    B, S, I = x_bsi.shape
    assert I == INPUT_SIZE == 1, "kernel exploits input_size == 1 (module spec)"

    # Only wrapper glue: squeeze the trailing size-1 feature dim.
    x2d = x_bsi.astype(jnp.float32).reshape(B, S)

    vmem = pl.BlockSpec(memory_space=pltpu.MemorySpace.VMEM)
    return pl.pallas_call(
        _rnn_kernel,
        out_shape=jax.ShapeDtypeStruct((B, OUTPUT_SIZE), jnp.float32),
        in_specs=[vmem, vmem],
        out_specs=vmem,
    )(x2d, packed_params)


def init_params(key, input_size=INPUT_SIZE, hidden_size=HIDDEN_SIZE,
                output_size=OUTPUT_SIZE):
    """Deterministic synthetic parameters matching nn.RNN / nn.Linear shapes."""
    ks = jax.random.split(key, 6)
    bound = 1.0 / jnp.sqrt(hidden_size)
    u = lambda k, shape: jax.random.uniform(k, shape, jnp.float32, -bound, bound)
    w_ih = u(ks[0], (hidden_size, input_size))    # weight_ih_l0
    w_hh = u(ks[1], (hidden_size, hidden_size))   # weight_hh_l0
    b_ih = u(ks[2], (hidden_size,))               # bias_ih_l0
    b_hh = u(ks[3], (hidden_size,))               # bias_hh_l0
    w_fc = u(ks[4], (output_size, hidden_size))   # fc.weight
    b_fc = u(ks[5], (output_size,))               # fc.bias
    return (w_ih, w_hh, b_ih, b_hh, w_fc, b_fc)


def _reference(x_bsi, params):
    """Pure-JAX reference for a sanity check."""
    w_ih, w_hh, b_ih, b_hh, w_fc, b_fc = params
    B, S, I = x_bsi.shape
    h = jnp.zeros((B, w_hh.shape[0]), jnp.float32)
    for t in range(S):
        h = jnp.tanh(x_bsi[:, t, :] @ w_ih.T + b_ih + h @ w_hh.T + b_hh)
    return h @ w_fc.T + b_fc


if __name__ == "__main__":
    key = jax.random.PRNGKey(0)
    k_x, k_p = jax.random.split(key)

    B, S = 2, 8                                   # small batch / sequence length
    x = jax.random.normal(k_x, (B, S, INPUT_SIZE), jnp.float32)
    params = init_params(k_p)

    packed = jax.block_until_ready(pack_params(params))   # one-time, outside hot path
    fwd = jax.jit(rnn_forward)

    out = fwd(x, packed)
    out = jax.block_until_ready(out)

    ref = _reference(x, params)
    assert out.shape == (B, OUTPUT_SIZE)
    assert jnp.allclose(out, ref, atol=1e-5, rtol=1e-5)

    print("KERNEL_OK")
</pallas_src>

<mosaic_0001>
module attributes {stable_mosaic.version = 11 : i64} {
  func.func @_rnn_kernel(%arg0: memref<2x8xf32, #tpu.memory_space<vmem>>, %arg1: memref<20x16xf32, #tpu.memory_space<vmem>>, %arg2: memref<2x1xf32, #tpu.memory_space<vmem>>) attributes {dimension_semantics = [], scalar_prefetch = 0 : i64, scratch_operands = 0 : i64, tpu.core_type = #tpu.core_type<tc>} {
    %c0 = arith.constant 0 : index
    %c0_0 = arith.constant 0 : index
    %0 = vector.load %arg1[%c0, %c0_0] : memref<20x16xf32, #tpu.memory_space<vmem>>, vector<20x16xf32>
    %1 = vector.extract_strided_slice %0 {offsets = [0, 0], sizes = [16, 16], strides = [1, 1]} : vector<20x16xf32> to vector<16x16xf32>
    %2 = vector.extract_strided_slice %0 {offsets = [16, 0], sizes = [1, 16], strides = [1, 1]} : vector<20x16xf32> to vector<1x16xf32>
    %3 = vector.extract_strided_slice %0 {offsets = [17, 0], sizes = [1, 16], strides = [1, 1]} : vector<20x16xf32> to vector<1x16xf32>
    %4 = vector.extract_strided_slice %0 {offsets = [18, 0], sizes = [1, 16], strides = [1, 1]} : vector<20x16xf32> to vector<1x16xf32>
    %5 = vector.extract_strided_slice %0 {offsets = [19, 0], sizes = [1, 1], strides = [1, 1]} : vector<20x16xf32> to vector<1x1xf32>
    %c0_1 = arith.constant 0 : index
    %c0_2 = arith.constant 0 : index
    %6 = vector.load %arg0[%c0_1, %c0_2] : memref<2x8xf32, #tpu.memory_space<vmem>>, vector<2x8xf32>
    %7 = vector.extract_strided_slice %6 {offsets = [0, 0], sizes = [2, 1], strides = [1, 1]} : vector<2x8xf32> to vector<2x1xf32>
    %8 = vector.broadcast %7 : vector<2x1xf32> to vector<2x16xf32>
    %9 = vector.broadcast %2 : vector<1x16xf32> to vector<2x16xf32>
    %10 = arith.mulf %8, %9 : vector<2x16xf32>
    %11 = vector.broadcast %3 : vector<1x16xf32> to vector<2x16xf32>
    %12 = arith.addf %10, %11 : vector<2x16xf32>
    %13 = vector.extract_strided_slice %6 {offsets = [0, 1], sizes = [2, 1], strides = [1, 1]} : vector<2x8xf32> to vector<2x1xf32>
    %14 = vector.broadcast %13 : vector<2x1xf32> to vector<2x16xf32>
    %15 = vector.broadcast %2 : vector<1x16xf32> to vector<2x16xf32>
    %16 = arith.mulf %14, %15 : vector<2x16xf32>
    %17 = vector.broadcast %3 : vector<1x16xf32> to vector<2x16xf32>
    %18 = arith.addf %16, %17 : vector<2x16xf32>
    %19 = vector.extract_strided_slice %6 {offsets = [0, 2], sizes = [2, 1], strides = [1, 1]} : vector<2x8xf32> to vector<2x1xf32>
    %20 = vector.broadcast %19 : vector<2x1xf32> to vector<2x16xf32>
    %21 = vector.broadcast %2 : vector<1x16xf32> to vector<2x16xf32>
    %22 = arith.mulf %20, %21 : vector<2x16xf32>
    %23 = vector.broadcast %3 : vector<1x16xf32> to vector<2x16xf32>
    %24 = arith.addf %22, %23 : vector<2x16xf32>
    %25 = vector.extract_strided_slice %6 {offsets = [0, 3], sizes = [2, 1], strides = [1, 1]} : vector<2x8xf32> to vector<2x1xf32>
    %26 = vector.broadcast %25 : vector<2x1xf32> to vector<2x16xf32>
    %27 = vector.broadcast %2 : vector<1x16xf32> to vector<2x16xf32>
    %28 = arith.mulf %26, %27 : vector<2x16xf32>
    %29 = vector.broadcast %3 : vector<1x16xf32> to vector<2x16xf32>
    %30 = arith.addf %28, %29 : vector<2x16xf32>
    %31 = vector.extract_strided_slice %6 {offsets = [0, 4], sizes = [2, 1], strides = [1, 1]} : vector<2x8xf32> to vector<2x1xf32>
    %32 = vector.broadcast %31 : vector<2x1xf32> to vector<2x16xf32>
    %33 = vector.broadcast %2 : vector<1x16xf32> to vector<2x16xf32>
    %34 = arith.mulf %32, %33 : vector<2x16xf32>
    %35 = vector.broadcast %3 : vector<1x16xf32> to vector<2x16xf32>
    %36 = arith.addf %34, %35 : vector<2x16xf32>
    %37 = vector.extract_strided_slice %6 {offsets = [0, 5], sizes = [2, 1], strides = [1, 1]} : vector<2x8xf32> to vector<2x1xf32>
    %38 = vector.broadcast %37 : vector<2x1xf32> to vector<2x16xf32>
    %39 = vector.broadcast %2 : vector<1x16xf32> to vector<2x16xf32>
    %40 = arith.mulf %38, %39 : vector<2x16xf32>
    %41 = vector.broadcast %3 : vector<1x16xf32> to vector<2x16xf32>
    %42 = arith.addf %40, %41 : vector<2x16xf32>
    %43 = vector.extract_strided_slice %6 {offsets = [0, 6], sizes = [2, 1], strides = [1, 1]} : vector<2x8xf32> to vector<2x1xf32>
    %44 = vector.broadcast %43 : vector<2x1xf32> to vector<2x16xf32>
    %45 = vector.broadcast %2 : vector<1x16xf32> to vector<2x16xf32>
    %46 = arith.mulf %44, %45 : vector<2x16xf32>
    %47 = vector.broadcast %3 : vector<1x16xf32> to vector<2x16xf32>
    %48 = arith.addf %46, %47 : vector<2x16xf32>
    %49 = vector.extract_strided_slice %6 {offsets = [0, 7], sizes = [2, 1], strides = [1, 1]} : vector<2x8xf32> to vector<2x1xf32>
    %50 = vector.broadcast %49 : vector<2x1xf32> to vector<2x16xf32>
    %51 = vector.broadcast %2 : vector<1x16xf32> to vector<2x16xf32>
    %52 = arith.mulf %50, %51 : vector<2x16xf32>
    %53 = vector.broadcast %3 : vector<1x16xf32> to vector<2x16xf32>
    %54 = arith.addf %52, %53 : vector<2x16xf32>
    %55 = math.tanh %12 : vector<2x16xf32>
    %cst = arith.constant dense<0.000000e+00> : vector<2x16xf32>
    %56 = tpu.matmul %55, %1, %cst {dimension_numbers = #tpu.dot_dimension_numbers<[1], [0], [0], [1], [0, 0, 1, 1], [], []>} : vector<2x16xf32>, vector<16x16xf32>, vector<2x16xf32> -> vector<2x16xf32>
    %57 = arith.addf %18, %56 : vector<2x16xf32>
    %58 = math.tanh %57 : vector<2x16xf32>
    %cst_3 = arith.constant dense<0.000000e+00> : vector<2x16xf32>
    %59 = tpu.matmul %58, %1, %cst_3 {dimension_numbers = #tpu.dot_dimension_numbers<[1], [0], [0], [1], [0, 0, 1, 1], [], []>} : vector<2x16xf32>, vector<16x16xf32>, vector<2x16xf32> -> vector<2x16xf32>
    %60 = arith.addf %24, %59 : vector<2x16xf32>
    %61 = math.tanh %60 : vector<2x16xf32>
    %cst_4 = arith.constant dense<0.000000e+00> : vector<2x16xf32>
    %62 = tpu.matmul %61, %1, %cst_4 {dimension_numbers = #tpu.dot_dimension_numbers<[1], [0], [0], [1], [0, 0, 1, 1], [], []>} : vector<2x16xf32>, vector<16x16xf32>, vector<2x16xf32> -> vector<2x16xf32>
    %63 = arith.addf %30, %62 : vector<2x16xf32>
    %64 = math.tanh %63 : vector<2x16xf32>
    %cst_5 = arith.constant dense<0.000000e+00> : vector<2x16xf32>
    %65 = tpu.matmul %64, %1, %cst_5 {dimension_numbers = #tpu.dot_dimension_numbers<[1], [0], [0], [1], [0, 0, 1, 1], [], []>} : vector<2x16xf32>, vector<16x16xf32>, vector<2x16xf32> -> vector<2x16xf32>
    %66 = arith.addf %36, %65 : vector<2x16xf32>
    %67 = math.tanh %66 : vector<2x16xf32>
    %cst_6 = arith.constant dense<0.000000e+00> : vector<2x16xf32>
    %68 = tpu.matmul %67, %1, %cst_6 {dimension_numbers = #tpu.dot_dimension_numbers<[1], [0], [0], [1], [0, 0, 1, 1], [], []>} : vector<2x16xf32>, vector<16x16xf32>, vector<2x16xf32> -> vector<2x16xf32>
    %69 = arith.addf %42, %68 : vector<2x16xf32>
    %70 = math.tanh %69 : vector<2x16xf32>
    %cst_7 = arith.constant dense<0.000000e+00> : vector<2x16xf32>
    %71 = tpu.matmul %70, %1, %cst_7 {dimension_numbers = #tpu.dot_dimension_numbers<[1], [0], [0], [1], [0, 0, 1, 1], [], []>} : vector<2x16xf32>, vector<16x16xf32>, vector<2x16xf32> -> vector<2x16xf32>
    %72 = arith.addf %48, %71 : vector<2x16xf32>
    %73 = math.tanh %72 : vector<2x16xf32>
    %cst_8 = arith.constant dense<0.000000e+00> : vector<2x16xf32>
    %74 = tpu.matmul %73, %1, %cst_8 {dimension_numbers = #tpu.dot_dimension_numbers<[1], [0], [0], [1], [0, 0, 1, 1], [], []>} : vector<2x16xf32>, vector<16x16xf32>, vector<2x16xf32> -> vector<2x16xf32>
    %75 = arith.addf %54, %74 : vector<2x16xf32>
    %76 = math.tanh %75 : vector<2x16xf32>
    %77 = vector.broadcast %4 : vector<1x16xf32> to vector<2x16xf32>
    %78 = arith.mulf %76, %77 : vector<2x16xf32>
    %cst_9 = arith.constant dense<0.000000e+00> : vector<2xf32>
    %79 = vector.multi_reduction <add>, %78, %cst_9 [1] : vector<2x16xf32> to vector<2xf32>
    %80 = vector.shape_cast %79 : vector<2xf32> to vector<2x1xf32>
    %81 = vector.broadcast %5 : vector<1x1xf32> to vector<2x1xf32>
    %82 = arith.addf %80, %81 : vector<2x1xf32>
    %c0_10 = arith.constant 0 : index
    %c0_11 = arith.constant 0 : index
    %83 = vector.load %arg2[%c0_10, %c0_11] : memref<2x1xf32, #tpu.memory_space<vmem>>, vector<2x1xf32>
    tpu.vector_store %arg2[%c0_10, %c0_11], %82 {strides = array<i32>} : memref<2x1xf32, #tpu.memory_space<vmem>>, vector<2x1xf32>,
    return
  }
}

</mosaic_0001>

<bundles_post_ra>
// kernel: rnn_forward.1
= control target key start
LH: loop header
LB: loop body
LE: loop exit
PB: predicated region body
PF: predicated region fallthrough
CT: control target
= control target key end

     0   :  { %v731_v0 = vmov 0   ;;  %v732_v3 = vmov 0.0   ;;  %vm733_vm0 = vmmov 0   ;;  %v734_v5 = vmov 1   ;;  %s866_s0 = inlined_call_operand.vmem [shape: f32[2,8], index: 0, kind: input, shape index: {}]   ;;  %s867_s1 = inlined_call_operand.vmem [shape: f32[20,16], index: 1, kind: input, shape index: {}]   ;;  %s868_s2 = inlined_call_operand.vmem [shape: f32[2,1], index: 2, kind: output, shape index: {}]  }
   0x1   :  { %706 = vset.pattern.permute.xlu0 %v731_v0  ;;  %v759_v1 = vld [vmem:[%s866_s0] sm:$0x3]  ;;  %v765_v2 = vld [vmem:[%s867_s1 + $0x8] sm:$0xff]  ;;  %647 = vmatprep.subr.mxu0 %v732_v3  ;;  %v20_v6 = vlaneseq  ;;  %v793_v9 = vld [vmem:[%s867_s1 + $0x10] sm:$0xf]  ;;  %vm73_vm1 = vcmask 130048  }
   0x2   :  { %17 = vperm.xlu0 %706, %v759_v1   ;;  %v771_v4 = vld [vmem:[%s867_s1] sm:$0xff]  ;;  %651 = vmatprep.mubr.msk.f32.mxu0 %vm733_vm0, %v732_v3  ;;  %v735_v17 = vmov 2   ;;  %v736_v25 = vmov 3   ;;  %v737_v33 = vmov 4   ;;  %v738_v41 = vmov 5  }
   0x3   :  { %648 = vmatpush3.msra.mxu0 %v765_v2  ;;  %654 = vmatprep.subr.mxu1 %v732_v3  ;;  %v787_v7 = vshrl.u32 %v20_v6, 7  ;;  %v739_v49 = vmov 6   ;;  %v740_v57 = vmov 7   ;;  %vm604_vm2 = vcmask 123904  }
   0x4   :  { %649 = vmatprep.subr.mxu0 %v732_v3  ;;  %655 = vmatpush3.msra.mxu1 %v765_v2  ;;  %vm613_vm3 = vcmask 1024  }
   0x5   :  { %650 = vmatpush3.msra.mxu0 %v771_v4  ;;  %656 = vmatprep.subr.mxu1 %v732_v3  ;;  %v22_v8 = vsub.s32 0, %v787_v7  ;;  %v27_v10 = vsub.s32 1, %v787_v7 }
   0x6   :  { %657 = vmatpush3.msra.mxu1 %v771_v4  ;;  %658 = vmatprep.mubr.msk.f32.mxu1 %vm733_vm0, %v732_v3 }
   0x7   :  { %661 = vmatprep.subr.mxu0 %v732_v3  ;;  %668 = vmatprep.subr.mxu1 %v732_v3  ;;  %v797_v11 = vrot.slane %v793_v9, %v22_v8  ;;  %v800_v12 = vrot.slane %v793_v9, %v27_v10  ;;  %v601_v8 = vsub.s32 2, %v787_v7 }
   0x8   :  { %707 = vset.pattern.permute.xlu0 %v734_v5  ;;  %708 = vset.pattern.permute.xlu1 %v735_v17 }
   0x9   :  { %31 = vperm.xlu0 %707, %v759_v1   ;;  %37 = vperm.xlu1 %708, %v759_v1   ;;  %v602_v10 = vrot.slane %v793_v9, %v601_v8 }
   0xd   :  { %709 = vset.pattern.permute.xlu1 %v736_v25  ;;  %711 = vset.pattern.permute.xlu0 %v738_v41 }
   0xe   :  { %43 = vperm.xlu1 %709, %v759_v1   ;;  %55 = vperm.xlu0 %711, %v759_v1  }
  0x12   :  { %710 = vset.pattern.permute.xlu1 %v737_v33  ;;  %714 = vset.pattern.permute.xlu0 %v740_v57 }
  0x13   :  { %49 = vperm.xlu1 %710, %v759_v1  }
  0x17   :  { %712 = vset.pattern.permute.xlu1 %v739_v49 }
  0x18   :  { %61 = vperm.xlu1 %712, %v759_v1  }
  0x1c   :  { %713 = vset.pattern.permute.xlu1 %v740_v57 }
  0x1d   :  { %67 = vperm.xlu1 %713, %v759_v1  }
  0x7d   :  { %v18_v13 = vpop.permute.xlu0 %17 }
  0x7e   :  { %v24_v14 = vmul.f32 %v797_v11, %v18_v13 }
  0x80   :  { %v29_v15 = vadd.f32 %v800_v12, %v24_v14 }
  0x82   :  { %715 = vtanh.f32 %v29_v15 }
  0x84   :  { %v32_v18 = vpop.permute.xlu0 %31  ;;  %v38_v26 = vpop.permute.xlu1 %37 }
  0x85   :  { %v34_v19 = vmul.f32 %v32_v18, %v797_v11  ;;  %v40_v27 = vmul.f32 %v38_v26, %v797_v11 }
  0x87   :  { %v35_v20 = vadd.f32 %v34_v19, %v800_v12  ;;  %v41_v28 = vadd.f32 %v40_v27, %v800_v12 }
  0x89   :  { %v44_v34 = vpop.permute.xlu1 %43  ;;  %v56_v50 = vpop.permute.xlu0 %55 }
  0x8a   :  { %v46_v35 = vmul.f32 %v44_v34, %v797_v11  ;;  %v58_v51 = vmul.f32 %v56_v50, %v797_v11 }
  0x8c   :  { %v47_v36 = vadd.f32 %v46_v35, %v800_v12  ;;  %v59_v52 = vadd.f32 %v58_v51, %v800_v12 }
  0x8e   :  { %v50_v42 = vpop.permute.xlu1 %49 }
  0x8f   :  { %v716_v16 = vpop.eup %715  ;;  %v52_v43 = vmul.f32 %v50_v42, %v797_v11 }
  0x90   :  { %652 = vmatmul.mubr.msk.f32.vlgmr.msra.gmra.mxu0 %vm73_vm1, %v716_v16  ;;  %v610_v16 = vsub.s32 3, %v787_v7 }
  0x91   :  { %662 = vmatpush3.msra.mxu0 %v765_v2  ;;  %665 = vmatprep.mubr.msk.f32.mxu0 %vm733_vm0, %v732_v3  ;;  %v53_v44 = vadd.f32 %v52_v43, %v800_v12 }
  0x92   :  { %663 = vmatprep.subr.mxu0 %v732_v3  ;;  %v611_v17 = vrot.slane %v793_v9, %v610_v16 }
  0x93   :  { %664 = vmatpush3.msra.mxu0 %v771_v4  ;;  %v62_v58 = vpop.permute.xlu1 %61 }
  0x94   :  { %675 = vmatprep.subr.mxu0 %v732_v3  ;;  %v64_v59 = vmul.f32 %v62_v58, %v797_v11 }
  0x96   :  { %v65_v60 = vadd.f32 %v64_v59, %v800_v12 }
 0x150   :  { %v143_v21 = vpop.f32.mrf.mxu0 }
 0x151   :  { %v147_v22 = vadd.f32 %v143_v21, %v35_v20 }
 0x152   :  { %v653_v23 = vpop.f32.mrf.mxu0 }
 0x153   :  { %717 = vtanh.f32 %v147_v22 }
 0x160   :  { %v718_v24 = vpop.eup %717 }
 0x161   :  { %659 = vmatmul.mubr.msk.f32.vlgmr.msra.gmra.mxu1 %vm73_vm1, %v718_v24 }
 0x162   :  { %669 = vmatpush3.msra.mxu1 %v765_v2  ;;  %672 = vmatprep.mubr.msk.f32.mxu1 %vm733_vm0, %v732_v3 }
 0x163   :  { %670 = vmatprep.subr.mxu1 %v732_v3 }
 0x164   :  { %671 = vmatpush3.msra.mxu1 %v771_v4 }
 0x165   :  { %682 = vmatprep.subr.mxu1 %v732_v3 }
 0x221   :  { %v218_v29 = vpop.f32.mrf.mxu1 }
 0x222   :  { %v222_v30 = vadd.f32 %v218_v29, %v41_v28 }
 0x223   :  { %v660_v31 = vpop.f32.mrf.mxu1 }
 0x224   :  { %719 = vtanh.f32 %v222_v30 }
 0x231   :  { %v720_v32 = vpop.eup %719 }
 0x232   :  { %666 = vmatmul.mubr.msk.f32.vlgmr.msra.gmra.mxu0 %vm73_vm1, %v720_v32 }
 0x233   :  { %676 = vmatpush3.msra.mxu0 %v765_v2  ;;  %679 = vmatprep.mubr.msk.f32.mxu0 %vm733_vm0, %v732_v3 }
 0x234   :  { %677 = vmatprep.subr.mxu0 %v732_v3 }
 0x235   :  { %678 = vmatpush3.msra.mxu0 %v771_v4 }
 0x236   :  { %689 = vmatprep.subr.mxu0 %v732_v3 }
 0x2f2   :  { %v293_v37 = vpop.f32.mrf.mxu0 }
 0x2f3   :  { %v297_v38 = vadd.f32 %v293_v37, %v47_v36 }
 0x2f4   :  { %v667_v39 = vpop.f32.mrf.mxu0 }
 0x2f5   :  { %721 = vtanh.f32 %v297_v38 }
 0x302   :  { %v722_v40 = vpop.eup %721 }
 0x303   :  { %673 = vmatmul.mubr.msk.f32.vlgmr.msra.gmra.mxu1 %vm73_vm1, %v722_v40 }
 0x304   :  { %683 = vmatpush3.msra.mxu1 %v765_v2  ;;  %686 = vmatprep.mubr.msk.f32.mxu1 %vm733_vm0, %v732_v3 }
 0x305   :  { %684 = vmatprep.subr.mxu1 %v732_v3 }
 0x306   :  { %685 = vmatpush3.msra.mxu1 %v771_v4 }
 0x3c3   :  { %v368_v45 = vpop.f32.mrf.mxu1 }
 0x3c4   :  { %v372_v46 = vadd.f32 %v368_v45, %v53_v44 }
 0x3c5   :  { %v674_v47 = vpop.f32.mrf.mxu1 }
 0x3c6   :  { %723 = vtanh.f32 %v372_v46 }
 0x3d3   :  { %v724_v48 = vpop.eup %723 }
 0x3d4   :  { %680 = vmatmul.mubr.msk.f32.vlgmr.msra.gmra.mxu0 %vm73_vm1, %v724_v48 }
 0x3d5   :  { %690 = vmatpush3.msra.mxu0 %v765_v2  ;;  %693 = vmatprep.mubr.msk.f32.mxu0 %vm733_vm0, %v732_v3  ;;  %v68_v2 = vpop.permute.xlu1 %67 }
 0x3d6   :  { %691 = vmatprep.subr.mxu0 %v732_v3  ;;  %v70_v3 = vmul.f32 %v68_v2, %v797_v11 }
 0x3d7   :  { %692 = vmatpush3.msra.mxu0 %v771_v4 }
 0x3d8   :  { %v71_v4 = vadd.f32 %v70_v3, %v800_v12 }
 0x494   :  { %v443_v53 = vpop.f32.mrf.mxu0 }
 0x495   :  { %v447_v54 = vadd.f32 %v443_v53, %v59_v52 }
 0x496   :  { %v681_v55 = vpop.f32.mrf.mxu0 }
 0x497   :  { %725 = vtanh.f32 %v447_v54 }
 0x4a4   :  { %v726_v56 = vpop.eup %725 }
 0x4a5   :  { %687 = vmatmul.mubr.msk.f32.vlgmr.msra.gmra.mxu1 %vm73_vm1, %v726_v56 }
 0x565   :  { %v518_v61 = vpop.f32.mrf.mxu1 }
 0x566   :  { %v522_v62 = vadd.f32 %v518_v61, %v65_v60 }
 0x567   :  { %v688_v63 = vpop.f32.mrf.mxu1 }
 0x568   :  { %727 = vtanh.f32 %v522_v62 }
 0x575   :  { %v728_v0 = vpop.eup %727 }
 0x576   :  { %694 = vmatmul.mubr.msk.f32.vlgmr.msra.gmra.mxu0 %vm73_vm1, %v728_v0 }
 0x636   :  { %v593_v5 = vpop.f32.mrf.mxu0 }
 0x637   :  { %v597_v6 = vadd.f32 %v593_v5, %v71_v4 }
 0x638   :  { %v695_v1 = vpop.f32.mrf.mxu0 }
 0x639   :  { %729 = vtanh.f32 %v597_v6 }
 0x646   :  { %v730_v13 = vpop.eup %729 }
 0x647   :  { %v603_v14 = vmul.f32 %v730_v13, %v602_v10 }
 0x649   :  { %v605_v15 = vsel %vm604_vm2, %v603_v14, 0.0 }
 0x64a   :  { %606 = vadd.xlane.f32.xlu0 %v605_v15 }
 0x6d3   :  { %v607_v11 = vpop.xlane.xlu0 %606 }
 0x6d4   :  { %v612_v12 = vadd.f32 %v611_v17, %v607_v11 }
 0x6d6   :  { %614 = vst.msk [vmem:[%s868_s2] sm:$0x3] %vm613_vm3, %v612_v12 }

</bundles_post_ra>
